<compile_context>
chip_gen: v7x
topology: tpu7x:2x2x1
jax: 0.10.0
libtpu: 0.0.40
codegen_flags: <defaults>
</compile_context>

<pallas_src>
import jax
import jax.numpy as jnp
from jax.experimental import pallas as pl
from jax.experimental.pallas import tpu as pltpu


IN_CHANNELS = 264  # the reference hard-codes randn(..., 264) fed to Linear(in_channels, ...)


def _round_up(x, m):
    return (x + m - 1) // m * m


def _cee_kernel(b2_ref, l_ref, b1_ref, w2_ref, z_ref, out_ref):
    """One tile of TM edges: h = relu(L @ z + b1); out = sigmoid(w2 . h + b2)."""
    tm = out_ref.shape[-1]
    # bf16 x bf16 -> f32 on the MXU (native on all TPU generations).
    h = jnp.dot(l_ref[...], z_ref[...], preferred_element_type=jnp.float32)
    h = jnp.maximum(h + b1_ref[...], 0.0)                               # (H, TM) f32
    # Second Linear has out_features=1: VPU multiply + sublane reduction instead
    # of a degenerate (H x 1) MXU matmul.
    y = jnp.sum(h * w2_ref[...], axis=0, keepdims=True) + b2_ref[0]     # (1, TM)
    out_ref[...] = jax.nn.sigmoid(y).reshape(1, 1, tm)


def cee_forward_pallas(chol, b1, w2, b2, z, num_edges, tm):
    """sigmoid(w2 . relu(L @ z + b1) + b2) over all edge columns of z -> (grid*tm,) f32."""
    h_dim = chol.shape[0]
    grid = pl.cdiv(num_edges, tm)
    b2_arr = jnp.asarray(b2, dtype=jnp.float32).reshape(1)

    out = pl.pallas_call(
        _cee_kernel,
        grid=(grid,),
        in_specs=[
            pl.BlockSpec(memory_space=pltpu.MemorySpace.SMEM),     # b2 (1,) f32
            pl.BlockSpec((h_dim, h_dim), lambda i: (0, 0)),        # L  (H,H) bf16, VMEM-resident
            pl.BlockSpec((h_dim, 1), lambda i: (0, 0)),            # b1 (H,1) f32, VMEM-resident
            pl.BlockSpec((h_dim, 1), lambda i: (0, 0)),            # w2 (H,1) f32, VMEM-resident
            pl.BlockSpec((h_dim, tm), lambda i: (0, i)),           # z  (H,TM) bf16, streamed
        ],
        out_specs=pl.BlockSpec((1, 1, tm), lambda i: (i, 0, 0)),   # lane-dense output tile
        out_shape=jax.ShapeDtypeStruct((grid, 1, tm), jnp.float32),
        compiler_params=pltpu.CompilerParams(
            dimension_semantics=("parallel",),                     # shards tiles across TCs (v7x)
        ),
    )(b2_arr, chol, b1, w2, z)
    return out.reshape(grid * tm)


class CEEPallas:
    """JAX/Pallas port of the PyTorch CEE module."""

    def __init__(self, in_channels, out_channels, num_nodes, *, param_key, tile_m=4096):
        assert in_channels == IN_CHANNELS, (
            "reference forward feeds randn(..., 264) into the first Linear")
        self.num_nodes = num_nodes
        self.tile_m = _round_up(tile_m, 128)
        k1, k2, k3, k4 = jax.random.split(param_key, 4)
        # nn.Linear init: U(-1/sqrt(fan_in), 1/sqrt(fan_in)); weight layout (out, in).
        bound1 = 1.0 / (in_channels ** 0.5)
        bound2 = 1.0 / (out_channels ** 0.5)
        self.w1 = jax.random.uniform(k1, (out_channels, in_channels), jnp.float32,
                                     -bound1, bound1)
        self.b1 = jax.random.uniform(k2, (out_channels, 1), jnp.float32,
                                     -bound1, bound1)
        self.w2 = jax.random.uniform(k3, (out_channels, 1), jnp.float32,
                                     -bound2, bound2)
        self.b2 = jax.random.uniform(k4, (1,), jnp.float32, -bound2, bound2)
        # One-time Cholesky factor of the pre-activation covariance:
        # x ~ N(0, I_K)  =>  W1 @ x ~ N(0, W1 W1^T) == L @ z with z ~ N(0, I_H).
        cov = self.w1 @ self.w1.T + 1e-6 * jnp.eye(out_channels, dtype=jnp.float32)
        self.chol = jnp.linalg.cholesky(cov).astype(jnp.bfloat16)

    # ---- tiling / noise helpers ------------------------------------------------
    def _tiling(self, num_edges):
        # Lane-dense tile width; force >=2 tiles when possible so the "parallel"
        # grid axis can occupy both TensorCores on v7x.
        tm = min(self.tile_m, max(128, _round_up(pl.cdiv(num_edges, 2), 128)))
        grid = pl.cdiv(num_edges, tm)
        return tm, grid

    def _sample_noise(self, noise_seed, num_edges):
        tm, grid = self._tiling(num_edges)
        h_dim = self.chol.shape[0]
        # TODO(synk): torch.randn's exact RNG stream is not reproducible in JAX; the
        # noise comes from jax.random (same N(0,1) distribution, different draws).
        z = jax.random.normal(jax.random.PRNGKey(noise_seed),
                              (h_dim, grid * tm), jnp.bfloat16)
        return z, tm

    # ---- forward ----------------------------------------------------------------
    def __call__(self, cascaded_edge_encoding, vertex_features, *, noise_seed=0):
        # cascaded_edge_encoding / vertex_features are unused (matches the reference).
        del cascaded_edge_encoding, vertex_features
        n = self.num_nodes
        num_edges = n * n
        z, tm = self._sample_noise(noise_seed, num_edges)
        flat = cee_forward_pallas(self.chol, self.b1, self.w2, self.b2,
                                  z, num_edges, tm)
        return flat[:num_edges].reshape(n, n)

    def reference_forward(self, *, noise_seed=0):
        """Pure-JAX reference on the SAME noise draw (numerical validation only)."""
        n = self.num_nodes
        num_edges = n * n
        z, _ = self._sample_noise(noise_seed, num_edges)
        h = jnp.maximum(self.chol.astype(jnp.float32) @ z.astype(jnp.float32)
                        + self.b1, 0.0)
        y = jnp.sum(h * self.w2, axis=0) + self.b2[0]
        return jax.nn.sigmoid(y)[:num_edges].reshape(n, n)


if __name__ == "__main__":
    key = jax.random.PRNGKey(0)
    k_params, k_edge, k_vert = jax.random.split(key, 3)

    num_nodes = 16
    in_channels = IN_CHANNELS
    out_channels = 32
    n_heads = 4

    # Inputs as described by the module docstring (unused by the forward pass).
    cascaded_edge_encoding = jax.random.normal(
        k_edge, (num_nodes, num_nodes, n_heads), dtype=jnp.float32)
    vertex_features = jax.random.normal(
        k_vert, (num_nodes, 128), dtype=jnp.float32)

    model = CEEPallas(in_channels, out_channels, num_nodes, param_key=k_params)
    adj = model(cascaded_edge_encoding, vertex_features, noise_seed=42)
    adj = jax.block_until_ready(adj)

    # Shape / range / variability sanity checks.
    assert adj.shape == (num_nodes, num_nodes)
    assert bool(jnp.all(jnp.isfinite(adj)))
    assert bool(jnp.all((adj >= 0.0) & (adj <= 1.0)))   # sigmoid range sanity check
    assert float(jnp.std(adj)) > 0.0                    # noise actually varies

    # Numerical check against a pure-JAX reference on the same noise draw.
    ref = jax.block_until_ready(model.reference_forward(noise_seed=42))
    assert bool(jnp.allclose(adj, ref, atol=5e-3)), float(jnp.max(jnp.abs(adj - ref)))

    print("KERNEL_OK")
</pallas_src>

<mosaic_0001>
module attributes {stable_mosaic.version = 11 : i64} {
  func.func @_cee_kernel(%arg0: i32, %arg1: memref<1xf32, #tpu.memory_space<smem>>, %arg2: memref<32x32xbf16, #tpu.memory_space<vmem>>, %arg3: memref<32x1xf32, #tpu.memory_space<vmem>>, %arg4: memref<32x1xf32, #tpu.memory_space<vmem>>, %arg5: memref<32x128xbf16, #tpu.memory_space<vmem>>, %arg6: memref<1x1x128xf32, #tpu.memory_space<vmem>>) attributes {dimension_semantics = [#tpu.dimension_semantics<parallel>], iteration_bounds = array<i64: 2>, scalar_prefetch = 0 : i64, scratch_operands = 0 : i64, tpu.core_type = #tpu.core_type<tc>, window_params = [{transform_indices = @transform_0, window_bounds = array<i64: 1>}, {pipeline_mode = #tpu.pipeline_mode<synchronous>, transform_indices = @transform_1, window_bounds = array<i64: 32, 32>}, {pipeline_mode = #tpu.pipeline_mode<synchronous>, transform_indices = @transform_2, window_bounds = array<i64: 32, 1>}, {pipeline_mode = #tpu.pipeline_mode<synchronous>, transform_indices = @transform_3, window_bounds = array<i64: 32, 1>}, {transform_indices = @transform_4, window_bounds = array<i64: 32, 128>}, {transform_indices = @transform_5, window_bounds = array<i64: 1, 1, 128>}]} {
    %c0 = arith.constant 0 : index
    %c0_0 = arith.constant 0 : index
    %0 = vector.load %arg2[%c0, %c0_0] : memref<32x32xbf16, #tpu.memory_space<vmem>>, vector<32x32xbf16>
    %c0_1 = arith.constant 0 : index
    %c0_2 = arith.constant 0 : index
    %1 = vector.load %arg5[%c0_1, %c0_2] : memref<32x128xbf16, #tpu.memory_space<vmem>>, vector<32x128xbf16>
    %cst = arith.constant dense<0.000000e+00> : vector<32x128xf32>
    %2 = tpu.matmul %0, %1, %cst {dimension_numbers = #tpu.dot_dimension_numbers<[1], [0], [0], [1], [0, 0, 1, 1], [], []>} : vector<32x32xbf16>, vector<32x128xbf16>, vector<32x128xf32> -> vector<32x128xf32>
    %c0_3 = arith.constant 0 : index
    %c0_4 = arith.constant 0 : index
    %3 = vector.load %arg3[%c0_3, %c0_4] : memref<32x1xf32, #tpu.memory_space<vmem>>, vector<32x1xf32>
    %4 = vector.broadcast %3 : vector<32x1xf32> to vector<32x128xf32>
    %5 = arith.addf %2, %4 : vector<32x128xf32>
    %cst_5 = arith.constant 0.000000e+00 : f32
    %6 = vector.broadcast %cst_5 : f32 to vector<32x128xf32>
    %7 = arith.maximumf %5, %6 : vector<32x128xf32>
    %c0_6 = arith.constant 0 : index
    %c0_7 = arith.constant 0 : index
    %8 = vector.load %arg4[%c0_6, %c0_7] : memref<32x1xf32, #tpu.memory_space<vmem>>, vector<32x1xf32>
    %9 = vector.broadcast %8 : vector<32x1xf32> to vector<32x128xf32>
    %10 = arith.mulf %7, %9 : vector<32x128xf32>
    %cst_8 = arith.constant dense<0.000000e+00> : vector<128xf32>
    %11 = vector.multi_reduction <add>, %10, %cst_8 [0] : vector<32x128xf32> to vector<128xf32>
    %12 = vector.shape_cast %11 : vector<128xf32> to vector<1x128xf32>
    %c0_9 = arith.constant 0 : index
    %13 = memref.load %arg1[%c0_9] : memref<1xf32, #tpu.memory_space<smem>>
    %14 = vector.broadcast %13 : f32 to vector<1x128xf32>
    %15 = arith.addf %12, %14 : vector<1x128xf32>
    %16 = arith.negf %15 : vector<1x128xf32>
    %17 = math.exp %16 : vector<1x128xf32>
    %cst_10 = arith.constant 1.000000e+00 : f32
    %18 = vector.broadcast %cst_10 : f32 to vector<1x128xf32>
    %19 = arith.addf %18, %17 : vector<1x128xf32>
    %20 = arith.divf %18, %19 : vector<1x128xf32>
    %21 = vector.shape_cast %20 : vector<1x128xf32> to vector<1x1x128xf32>
    %c0_11 = arith.constant 0 : index
    %c0_12 = arith.constant 0 : index
    %c0_13 = arith.constant 0 : index
    %22 = vector.load %arg6[%c0_11, %c0_12, %c0_13] : memref<1x1x128xf32, #tpu.memory_space<vmem>>, vector<1x1x128xf32>
    tpu.vector_store %arg6[%c0_11, %c0_12, %c0_13], %21 {strides = array<i32>} : memref<1x1x128xf32, #tpu.memory_space<vmem>>, vector<1x1x128xf32>,
    return
  }
  func.func @transform_0(%arg0: i32) -> i32 {
    %c0_i32 = arith.constant 0 : i32
    %c0_i32_0 = arith.constant 0 : i32
    return %c0_i32 : i32
  }
  func.func @transform_1(%arg0: i32) -> (i32, i32) {
    %c0_i32 = arith.constant 0 : i32
    %c0_i32_0 = arith.constant 0 : i32
    %c0_i32_1 = arith.constant 0 : i32
    return %c0_i32, %c0_i32_0 : i32, i32
  }
  func.func @transform_2(%arg0: i32) -> (i32, i32) {
    %c0_i32 = arith.constant 0 : i32
    %c0_i32_0 = arith.constant 0 : i32
    %c0_i32_1 = arith.constant 0 : i32
    return %c0_i32, %c0_i32_0 : i32, i32
  }
  func.func @transform_3(%arg0: i32) -> (i32, i32) {
    %c0_i32 = arith.constant 0 : i32
    %c0_i32_0 = arith.constant 0 : i32
    %c0_i32_1 = arith.constant 0 : i32
    return %c0_i32, %c0_i32_0 : i32, i32
  }
  func.func @transform_4(%arg0: i32) -> (i32, i32) {
    %c0_i32 = arith.constant 0 : i32
    %c0_i32_0 = arith.constant 0 : i32
    return %c0_i32, %arg0 : i32, i32
  }
  func.func @transform_5(%arg0: i32) -> (i32, i32, i32) {
    %c0_i32 = arith.constant 0 : i32
    %c0_i32_0 = arith.constant 0 : i32
    %c0_i32_1 = arith.constant 0 : i32
    return %arg0, %c0_i32, %c0_i32_0 : i32, i32, i32
  }
}

</mosaic_0001>

<bundles_post_ra>
// kernel: tpu_custom_call.1
= control target key start
LH: loop header
LB: loop body
LE: loop exit
PB: predicated region body
PF: predicated region fallthrough
CT: control target
= control target key end

     0   :  { %s832_s0 = inlined_call_operand.<no memory space> [shape: f32[1], index: 0, kind: input, shape index: {}]   ;;  %s833_s1 = inlined_call_operand.vmem [shape: bf16[32,32], index: 1, kind: input, shape index: {}]   ;;  %s834_s2 = inlined_call_operand.vmem [shape: f32[32,1], index: 2, kind: input, shape index: {}]   ;;  %s835_s3 = inlined_call_operand.vmem [shape: f32[32,1], index: 3, kind: input, shape index: {}]   ;;  %s836_s4 = inlined_call_operand.vmem [shape: bf16[32,256], index: 4, kind: input, shape index: {}]   ;;  %s837_s5 = inlined_call_operand.hbm [shape: f32[2,1,128], index: 5, kind: output, shape index: {}]  }
   0x1   :  { %10 = sst [smem:[#allocation2]] %s832_s0 }
   0x2   :  { %11 = vsyncpa [#allocation5], 0 }
   0x3   :  { %13 = vsyncpa [#allocation5 + $0x1], 0  ;;  %s690_s20 = smov 0   ;;  %s692_s21 = smov 0  }
   0x4   :  { %s694_s22 = smov 0   ;;  %s696_s23 = smov 0  }
   0x5 LB: > { %s511_s0 = sadd.s32 4294967295, %s653_s23   ;;  %s512_s24 = sadd.s32 4294967294, %s653_s23   ;;  %s653_s23 = sphi %s696_s23, %s843_s23   ;;  %s649_s22 = sphi %s694_s22, %s842_s22   ;;  %s645_s21 = sphi %s692_s21, %s841_s21   ;;  %s641_s20 = sphi %s690_s20, %s840_s20  }
   0x6   : > { %s713_s25 = sadd.s32 1, %s653_s23   ;;  %s110_s26 = sadd.s32 1, %s649_s22 }
   0x7   : > { %s107_s27 = ssub.s32 %s653_s23, %s713_s25  ;;  %p117_p0 = scmp.ne.s32.totalorder %s649_s22, %s645_s21 }
   0x8   : > { %p108_p1 = scmp.eq.s32.totalorder %s107_s27, 0  ;;  %p118_p2 = scmp.eq.s32.totalorder %s653_s23, 0 }
   0x9   : > { %p147_p3 = scmp.eq.s32.totalorder %s511_s0, 1  ;;  %p152_p4 = scmp.ne.s32.totalorder %s645_s21, %s641_s20 }
   0xa   : > { %s726_s28 = scalar_select %p108_p1, %s649_s22, %s110_s26  }
   0xb   : > { %p119_p5 = por %p118_p2, %p117_p0  ;;  %p728_p6 = por %p147_p3, %p117_p0 }
   0xc   : > { %p153_p7 = scmp.eq.s32.totalorder %s512_s24, 1  ;;  %p514_p9 = scmp.ge.s32.totalorder %s653_s23, 2 }
   0xe   : > { %p732_p8 = por %p153_p7, %p152_p4  ;;  %181 = sbr.rel (%p514_p9) target bundleno = 28 (0x1c), region = 32 }
  0x15   : > { %184 = sbr.rel (!%p119_p5) target bundleno = 28 (0x1c), region = 36  ;;  %s186_s6 = sand.u32 (%p119_p5), 1, %s649_s22  }
  0x16   : > { %s516_s7 = sshll.u32 (%p119_p5), %s653_s23, 2  ;;  %s515_s8 = sshll.u32 (%p119_p5), %s186_s6, 4 }
  0x17   : > { %s190_s11 = scalar_lea.vmem (%p119_p5), %s836_s4, %s516_s7  ;;  %s188_s12 = scalar_lea.vmem (%p119_p5), [#allocation3], %s515_s8 }
  0x18   : > { %v206_v0 = vld [vmem:[%s190_s11] sm:$0xf] (%p119_p5)  ;;  %v208_v1 = vld [vmem:[%s190_s11 + $0x8] sm:$0xf] (%p119_p5)  ;;  %v210_v2 = vld [vmem:[%s190_s11 + $0x10] sm:$0xf] (%p119_p5) }
  0x19   : > { %207 = vst [vmem:[%s188_s12] sm:$0xf] (%p119_p5), %v206_v0  ;;  %209 = vst [vmem:[%s188_s12 + $0x4] sm:$0xf] (%p119_p5), %v208_v1  ;;  %v212_v3 = vld [vmem:[%s190_s11 + $0x18] sm:$0xf] (%p119_p5) }
  0x1a   : > { %211 = vst [vmem:[%s188_s12 + $0x8] sm:$0xf] (%p119_p5), %v210_v2  ;;  %213 = vst [vmem:[%s188_s12 + $0xc] sm:$0xf] (%p119_p5), %v212_v3 }
  0x1c PF: > { %p517_p10 = scmp.ge.s32.totalorder %s653_s23, 1  ;;  %p243_p11 = scmp.lt.s32.totalorder %s653_s23, 3 }
  0x1e   : > { %p244_p12 = pnand %p517_p10, %p243_p11 }
  0x1f   : > { %s747_s13 = sand.u32 (!%p244_p12), 1, %s645_s21   ;;  %v585_v4 = vld [vmem:[%s833_s1] sm:$0xff] (!%p244_p12)   ;;  %vm331_vm0 = vcmask (!%p244_p12), 261120   ;;  %v287_v6 = vld [vmem:[%s834_s2 + $0x10] sm:$0xff] (!%p244_p12)  ;;  %v655_v8 = vmov (!%p244_p12), 0   ;;  %v286_v10 = vld [vmem:[%s834_s2 + $0x8] sm:$0xff] (!%p244_p12) }
  0x20   : > { %247 = sbr.rel (%p244_p12) target bundleno = 324 (0x144), region = 77  ;;  %s518_s16 = sshll.u32 (!%p244_p12), %s747_s13, 4  ;;  %537 = vmatprep.mubr.msk.bf16.mxu0 (!%p244_p12), %vm331_vm0, %v585_v4  ;;  %v285_v5 = vld [vmem:[%s834_s2] sm:$0xff] (!%p244_p12)  ;;  %581 = vset.pattern.permute.xlu0 (!%p244_p12), %v655_v8  ;;  %v288_v11 = vld [vmem:[%s834_s2 + $0x18] sm:$0xff] (!%p244_p12)  ;;  %v586_v12 = vld [vmem:[%s833_s1 + $0x8] sm:$0xff] (!%p244_p12)  }
  0x21   : > { %s252_s26 = scalar_lea.vmem (!%p244_p12), [#allocation3], %s518_s16  ;;  %582 = vset.pattern.permute.xlu1 (!%p244_p12), %v655_v8  ;;  %291 = vperm.xlu0 (!%p244_p12), %581, %v285_v5   ;;  %v391_v13 = vld [vmem:[%s835_s3] sm:$0xff] (!%p244_p12)  ;;  %v392_v14 = vld [vmem:[%s835_s3 + $0x8] sm:$0xff] (!%p244_p12)  ;;  %v393_v15 = vld [vmem:[%s835_s3 + $0x10] sm:$0xff] (!%p244_p12)  ;;  %s428_s24 = sld [smem:[#allocation2]] (!%p244_p12) }
  0x22   : > { %v583_v7 = vld [vmem:[%s252_s26] sm:$0xff] (!%p244_p12)   ;;  %v584_v9 = vld [vmem:[%s252_s26 + $0x8] sm:$0xff] (!%p244_p12)   ;;  %301 = vperm.xlu1 (!%p244_p12), %582, %v287_v6   ;;  %s526_s26 = sshll.u32 (!%p244_p12), %s511_s0, 4  ;;  %s275_s27 = scalar_lea.vmem (!%p244_p12), [#allocation4], %s747_s13 }
  0x23   : > { %533 = vmatprep.subr.bf16.mxu0 (!%p244_p12), %v583_v7  ;;  %v394_v16 = vld [vmem:[%s835_s3 + $0x18] sm:$0xff] (!%p244_p12)  ;;  %s451_s6 = sshll.u32 (!%p244_p12), %s275_s27, 4  ;;  %s788_s9 = scalar_lea.hbm (!%p244_p12), %s837_s5, %s526_s26  ;;  %s790_s6 = int_to_ptr.vmem [resolvable:$true] %s451_s6 }
  0x24   : > { %534 = vmatpush3.bf16.msra.mxu0 (!%p244_p12), %v583_v7  ;;  %s439_s10 = scalar_lea.sflag (!%p244_p12), [#allocation5], %s747_s13  ;;  %s591_s11 = scalar_lea.vmem (!%p244_p12), %s790_s6, 16 }
  0x25   : > { %535 = vmatprep.subr.bf16.mxu0 (!%p244_p12), %v584_v9  ;;  %296 = vperm.xlu0 (!%p244_p12), %581, %v286_v10   ;;  %p592_p13 = scmp.ne.s32.totalorder (!%p244_p12), %s790_s6, %s591_s11  ;;  %s656_s0 = smov (!%p244_p12), [#allocation4]  }
  0x26   : > { %306 = vperm.xlu1 (!%p244_p12), %582, %v288_v11   ;;  %s595_s12 = sshll.u32 (!%p244_p12), %s656_s0, 4  ;;  %s596_s12 = int_to_ptr.vmem [resolvable:$false] %s595_s12 }
  0x27   : > { %v429_v49 = vstv %s428_s24  ;;  %p593_p0 = pnand %p592_p13, %p728_p6  ;;  %s597_s14 = scalar_lea.vmem %s596_s12, 32 }
  0x28   : > { %536 = vmatpush3.bf16.msra.mxu0 %v584_v9  ;;  %p598_p2 = scmp.lt.s32.totalorder %s790_s6, %s596_s12  ;;  %p599_p3 = scmp.lt.s32.totalorder %s597_s14, %s591_s11 }
  0x29   : > { %397 = vperm.xlu0 %581, %v391_v13   ;;  %p594_p1 = pneg %p593_p0 }
  0x2a   : > { %402 = vperm.xlu1 %582, %v392_v14   ;;  %p600_p4 = por %p599_p3, %p598_p2 }
  0x2b   : > { %538 = vmatmul.mubr.msk.bf16.vlgmr.msra.gmra.mrb[0].mxu0 %vm331_vm0, %v586_v12 }
  0x2c   : > { %p601_p5 = pnand %p600_p4, %p594_p1 }
  0x2d   : > { %407 = vperm.xlu0 %581, %v393_v15  }
  0x2e   : > { %412 = vperm.xlu1 %582, %v394_v16  }
  0xa0   : > { %v292_v17 = vpop.permute.xlu0 %291 }
  0xa1   : > { %v302_v18 = vpop.permute.xlu1 %301 }
  0xa4   : > { %v297_v19 = vpop.permute.xlu0 %296 }
  0xa5   : > { %v307_v20 = vpop.permute.xlu1 %306 }
  0xa8   : > { %v398_v26 = vpop.permute.xlu0 %397 }
  0xa9   : > { %v403_v31 = vpop.permute.xlu1 %402 }
  0xac   : > { %v408_v37 = vpop.permute.xlu0 %407 }
  0xad   : > { %v413_v40 = vpop.permute.xlu1 %412 }
  0xfe   : > { %v539_v21 = vpop.f32.mrb[0].mxu0 }
  0xff   : > { %v372_v22 = vpop.f32.mrb[1].mxu0  ;;  %v381_v23 = vadd.f32 %v539_v21, %v302_v18 }
 0x100   : > { %v373_v24 = vadd.f32 %v372_v22, %v292_v17  ;;  %v540_v25 = vpop.f32.mrb[2].mxu0 }
 0x101   : > { %v375_v27 = vpop.f32.mrb[3].mxu0  ;;  %v384_v29 = vadd.f32 %v540_v25, %v307_v20  ;;  %v389_v32 = vmax.f32 %v381_v23, 0.0 }
 0x102   : > { %v387_v28 = vmax.f32 %v373_v24, 0.0  ;;  %v376_v30 = vadd.f32 %v375_v27, %v297_v19 }
 0x103   : > { %v390_v35 = vmax.f32 %v384_v29, 0.0  ;;  %v417_v38 = vmul.f32 %v408_v37, %v389_v32 }
 0x104   : > { %v388_v33 = vmax.f32 %v376_v30, 0.0  ;;  %v415_v34 = vmul.f32 %v398_v26, %v387_v28 }
 0x105   : > { %v418_v41 = vmul.f32 %v413_v40, %v390_v35 }
 0x106   : > { %v416_v36 = vmul.f32 %v403_v31, %v388_v33 }
 0x108   : > { %v419_v39 = vadd.f32 %v416_v36, %v415_v34 }
 0x10a   : > { %v420_v42 = vadd.f32 %v419_v39, %v417_v38 }
 0x10c   : > { %v421_v43 = vadd.f32 %v420_v42, %v418_v41 }
 0x10e   : > { %v422_v44 = vrot.slane %v421_v43, 4 }
 0x110   : > { %v423_v45 = vadd.f32 %v422_v44, %v421_v43 }
 0x112   : > { %v424_v46 = vrot.slane %v423_v45, 2 }
 0x114   : > { %v425_v47 = vadd.f32 %v424_v46, %v423_v45 }
 0x116   : > { %v426_v48 = vrot.slane %v425_v47, 1 }
 0x118   : > { %v427_v50 = vadd.f32 %v426_v48, %v425_v47 }
 0x11a   : > { %v430_v51 = vadd.f32 %v429_v49, %v427_v50 }
 0x11c   : > { %v525_v52 = vmul.f32 -1.442695, %v430_v51 }
 0x11e   : > { %587 = vpow2.f32 %v525_v52 }
 0x128   : > { %v588_v53 = vpop.eup %587 }
 0x129   : > { %v434_v54 = vadd.f32 1.0, %v588_v53 }
 0x12b   : > { %589 = vrcp.f32 %v434_v54 }
 0x135   : > { %v590_v55 = vpop.eup %589 }
 0x136   : > { %437 = vst [vmem:[%s275_s27] sm:$0x1] %v590_v55 }
 0x137   : > { %604 = shalt.err (!%p601_p5)
}
 0x138   : > { %s605_s13 = scalar_lea.hbm %s788_s9, 16  ;;  %s609_s17 = scalar_lea.hbm %s837_s5, 32 }
 0x139   : > { %p606_p7 = scmp.ne.s32.totalorder %s788_s9, %s605_s13  ;;  %p610_p12 = scmp.lt.u32.totalorder %s788_s9, %s837_s5 }
 0x13a   : > { %p611_p13 = scmp.lt.u32.totalorder %s609_s17, %s605_s13  ;;  %p613_p1 = scmp.lt.u32.totalorder %s605_s13, %s788_s9 }
 0x13b   : > { %p607_p10 = pnand %p606_p7, %p728_p6 }
 0x13c   : > { %p612_p0 = por %p611_p13, %p610_p12 }
 0x13d   : > { %p608_p11 = pneg %p607_p10 }
 0x13e   : > { %p614_p2 = por %p613_p1, %p612_p0 }
 0x140   : > { %p615_p3 = pnand %p614_p2, %p608_p11 }
 0x142   : > { %618 = shalt.err (!%p615_p3)
}
 0x143   : > { %541 = dma.vmem_to_hbm [thread:$0]  (%p728_p6), %s790_s6, 16, %s788_s9, %s439_s10  }
 0x144 PF: > { %s463_s24 = sand.u32 1, %s641_s20   ;;  %p544_p4 = pnand %p514_p9, %p732_p8 }
 0x145   : > { %s464_s26 = scalar_lea.sflag [#allocation5], %s463_s24 }
 0x146   : > { %636 = dma.done.wait (!%p544_p4), %s464_s26, 16  }
 0x147   : > { %638 = vsyncadd (!%p544_p4), %s464_s26, 4294967280  ;;  %p16_p5 = scmp.ge.s32.totalorder %s713_s25, 4   ;;  %s840_s20 = smov %s645_s21 }
 0x148   : > { %s841_s21 = smov %s649_s22  ;;  %s842_s22 = smov %s726_s28 }
 0x149   : > { %s843_s23 = smov %s713_s25  ;;  %18 = sbr.rel (!%p16_p5) target bundleno = 5 (0x5), region = 121 }
 0x150   :  { %468 = vsyncpa [#allocation5], 1 }
 0x151   :  { %470 = vsyncpa [#allocation5 + $0x1], 1 }

</bundles_post_ra>
